<compile_context>
chip_gen: v6e
topology: v6e:2x2x1
jax: 0.10.0
libtpu: 0.0.40
codegen_flags: <defaults>
</compile_context>

<pallas_src>
import functools
import math

import jax
import jax.numpy as jnp
from jax.experimental import pallas as pl
from jax.experimental.pallas import tpu as pltpu


_INV_SQRT2 = 1.0 / math.sqrt(2.0)


def _gelu_exact(x):
    # PyTorch nn.GELU() default is the exact (erf) formulation.
    return 0.5 * x * (1.0 + jax.lax.erf(x * _INV_SQRT2))


def mlp_kernel(x_ref, w1_ref, b1_ref, w2_ref, b2_ref, o_ref, acc_ref):
    # x_ref:  (tm, C_in)        row tile of tokens (invariant across k)
    # w1_ref: (C_in, tk)        fc1 weight chunk
    # b1_ref: (1, tk)           fc1 bias chunk
    # w2_ref: (tk, C_out)       fc2 weight chunk
    # b2_ref: (1, C_out)        fc2 bias (grid-invariant)
    # o_ref:  (tm, C_out)       output tile (resident across k)
    # acc_ref:(tm, C_out) f32   VMEM accumulator scratch
    k = pl.program_id(1)

    @pl.when(k == 0)
    def _():
        acc_ref[...] = jnp.zeros_like(acc_ref)

    # fc1 for this hidden chunk; native-dtype MXU operands, f32 accumulation.
    h = jnp.dot(x_ref[...], w1_ref[...], preferred_element_type=jnp.float32)
    h = h + b1_ref[...].astype(jnp.float32)
    h = _gelu_exact(h)

    # TODO(synk): dropout with p>0 would need pltpu.prng_*; p=0.0 -> identity.

    # fc2 partial product for this hidden chunk, accumulated in f32.
    acc_ref[...] += jnp.dot(h.astype(w2_ref.dtype), w2_ref[...],
                            preferred_element_type=jnp.float32)

    @pl.when(k == pl.num_programs(1) - 1)
    def _():
        o_ref[...] = (acc_ref[...]
                      + b2_ref[...].astype(jnp.float32)).astype(o_ref.dtype)


def _round_up(x, m):
    return (x + m - 1) // m * m


def _choose_tk(c_hid, max_tk):
    """Hidden-dim chunk: either the full C_hid, or a 128-multiple divisor."""
    if c_hid <= max_tk or c_hid % 128 != 0:
        return c_hid
    for tk in range(max_tk, 127, -128):
        if c_hid % tk == 0:
            return tk
    return c_hid


@functools.partial(jax.jit, static_argnames=("tm", "tk"))
def _mlp_forward_2d(x2d, w1, b1, w2, b2, *, tm, tk):
    M, C_in = x2d.shape
    C_hid = w1.shape[1]
    C_out = w2.shape[1]

    grid = (M // tm, C_hid // tk)

    # VMEM budget: double-buffered in/out tiles + f32 accumulator + h headroom.
    xpe = jnp.dtype(x2d.dtype).itemsize
    wpe = jnp.dtype(w1.dtype).itemsize
    vmem_bytes = (
        2 * tm * C_in * xpe        # x tiles
        + 2 * C_in * tk * wpe      # w1 chunks
        + 2 * tk * wpe             # b1 chunks
        + 2 * tk * C_out * wpe     # w2 chunks
        + 2 * C_out * wpe          # b2
        + 2 * tm * C_out * xpe     # out tiles
        + tm * C_out * 4           # f32 accumulator scratch
        + tm * tk * 4              # live h intermediate
    )
    vmem_limit = int(min(max(2 * vmem_bytes, 32 * 1024 * 1024),
                         64 * 1024 * 1024))

    return pl.pallas_call(
        mlp_kernel,
        out_shape=jax.ShapeDtypeStruct((M, C_out), x2d.dtype),
        grid_spec=pltpu.PrefetchScalarGridSpec(
            num_scalar_prefetch=0,
            grid=grid,
            in_specs=[
                pl.BlockSpec((tm, C_in), lambda i, k: (i, 0)),
                pl.BlockSpec((C_in, tk), lambda i, k: (0, k)),
                pl.BlockSpec((1, tk), lambda i, k: (0, k)),
                pl.BlockSpec((tk, C_out), lambda i, k: (k, 0)),
                pl.BlockSpec((1, C_out), lambda i, k: (0, 0)),
            ],
            out_specs=pl.BlockSpec((tm, C_out), lambda i, k: (i, 0)),
            scratch_shapes=[pltpu.VMEM((tm, C_out), jnp.float32)],
        ),
        compiler_params=pltpu.CompilerParams(
            dimension_semantics=("parallel", "arbitrary"),
            vmem_limit_bytes=vmem_limit,
        ),
    )(x2d, w1, b1.reshape(1, C_hid), w2, b2.reshape(1, C_out))


def mlp_forward(x, w1, b1, w2, b2, *, tm=256, max_tk=512):
    """x: (..., C_in) -> (..., C_out).  Arbitrary leading dims, any M."""
    *lead, C_in = x.shape
    C_out = w2.shape[1]
    C_hid = w1.shape[1]
    M = math.prod(lead) if lead else 1

    x2d = x.reshape(M, C_in)

    # Row tile: multiple of 8, no larger than the (row-padded) token count.
    tm_eff = max(8, _round_up(min(tm, _round_up(M, 8)), 8))
    M_pad = _round_up(M, tm_eff)
    if M_pad != M:
        x2d = jnp.pad(x2d, ((0, M_pad - M), (0, 0)))

    tk = _choose_tk(C_hid, max_tk)

    out2d = _mlp_forward_2d(x2d, w1, b1, w2, b2, tm=tm_eff, tk=tk)
    if M_pad != M:
        out2d = out2d[:M]
    return out2d.reshape(*lead, C_out)


def init_mlp_params(key, in_features, hidden_features, out_features,
                    dtype=jnp.float32):
    """Deterministic init mimicking torch.nn.Linear defaults
    (uniform(-1/sqrt(fan_in), 1/sqrt(fan_in)))."""
    k1, k2, k3, k4 = jax.random.split(key, 4)
    bound1 = 1.0 / math.sqrt(in_features)
    bound2 = 1.0 / math.sqrt(hidden_features)
    # Stored transposed relative to torch (so kernel does x @ W).
    w1 = jax.random.uniform(k1, (in_features, hidden_features),
                            minval=-bound1, maxval=bound1, dtype=dtype)
    b1 = jax.random.uniform(k2, (hidden_features,),
                            minval=-bound1, maxval=bound1, dtype=dtype)
    w2 = jax.random.uniform(k3, (hidden_features, out_features),
                            minval=-bound2, maxval=bound2, dtype=dtype)
    b2 = jax.random.uniform(k4, (out_features,),
                            minval=-bound2, maxval=bound2, dtype=dtype)
    return w1, b1, w2, b2


if __name__ == "__main__":
    # Small, module-consistent shapes: batch=2, seq=8, in=16, hidden=32, out=16.
    B, N, C_in, C_hid, C_out = 2, 8, 16, 32, 16

    key = jax.random.PRNGKey(0)
    kx, kp = jax.random.split(key)
    x = jax.random.normal(kx, (B, N, C_in), dtype=jnp.float32)
    w1, b1, w2, b2 = init_mlp_params(kp, C_in, C_hid, C_out)

    y = mlp_forward(x, w1, b1, w2, b2)
    jax.block_until_ready(y)

    # Pure-JAX reference check (same math, no Pallas).
    h_ref = _gelu_exact(x.reshape(-1, C_in) @ w1 + b1)
    y_ref = (h_ref @ w2 + b2).reshape(B, N, C_out)
    assert y.shape == y_ref.shape
    assert jnp.allclose(y, y_ref, atol=1e-5, rtol=1e-5)

    print("KERNEL_OK")
</pallas_src>

<mosaic_0001>
module attributes {stable_mosaic.version = 11 : i64} {
  func.func @mlp_kernel(%arg0: i32, %arg1: i32, %arg2: memref<16x16xf32, #tpu.memory_space<vmem>>, %arg3: memref<16x32xf32, #tpu.memory_space<vmem>>, %arg4: memref<1x32xf32, #tpu.memory_space<vmem>>, %arg5: memref<32x16xf32, #tpu.memory_space<vmem>>, %arg6: memref<1x16xf32, #tpu.memory_space<vmem>>, %arg7: memref<16x16xf32, #tpu.memory_space<vmem>>, %arg8: memref<16x16xf32, #tpu.memory_space<vmem>>) attributes {dimension_semantics = [#tpu.dimension_semantics<parallel>, #tpu.dimension_semantics<arbitrary>], iteration_bounds = array<i64: 1, 1>, scalar_prefetch = 0 : i64, scratch_operands = 1 : i64, tpu.core_type = #tpu.core_type<tc>, window_params = [{transform_indices = @transform_0, window_bounds = array<i64: 16, 16>}, {transform_indices = @transform_1, window_bounds = array<i64: 16, 32>}, {transform_indices = @transform_2, window_bounds = array<i64: 1, 32>}, {transform_indices = @transform_3, window_bounds = array<i64: 32, 16>}, {pipeline_mode = #tpu.pipeline_mode<synchronous>, transform_indices = @transform_4, window_bounds = array<i64: 1, 16>}, {transform_indices = @transform_5, window_bounds = array<i64: 16, 16>}]} {
    %c0_i32 = arith.constant 0 : i32
    %0 = arith.cmpi eq, %arg1, %c0_i32 : i32
    %1 = arith.extui %0 : i1 to i32
    %c0_i32_0 = arith.constant 0 : i32
    %2 = arith.cmpi ne, %1, %c0_i32_0 : i32
    scf.if %2 {
      %cst_18 = arith.constant 0.000000e+00 : f32
      %25 = vector.broadcast %cst_18 : f32 to vector<16x16xf32>
      %c0_19 = arith.constant 0 : index
      %c0_20 = arith.constant 0 : index
      %26 = vector.load %arg8[%c0_19, %c0_20] : memref<16x16xf32, #tpu.memory_space<vmem>>, vector<16x16xf32>
      tpu.vector_store %arg8[%c0_19, %c0_20], %25 {strides = array<i32>} : memref<16x16xf32, #tpu.memory_space<vmem>>, vector<16x16xf32>,
    } else {
    }
    %c0 = arith.constant 0 : index
    %c0_1 = arith.constant 0 : index
    %3 = vector.load %arg2[%c0, %c0_1] : memref<16x16xf32, #tpu.memory_space<vmem>>, vector<16x16xf32>
    %c0_2 = arith.constant 0 : index
    %c0_3 = arith.constant 0 : index
    %4 = vector.load %arg3[%c0_2, %c0_3] : memref<16x32xf32, #tpu.memory_space<vmem>>, vector<16x32xf32>
    %cst = arith.constant dense<0.000000e+00> : vector<16x32xf32>
    %5 = tpu.matmul %3, %4, %cst {dimension_numbers = #tpu.dot_dimension_numbers<[1], [0], [0], [1], [0, 0, 1, 1], [], []>} : vector<16x16xf32>, vector<16x32xf32>, vector<16x32xf32> -> vector<16x32xf32>
    %c0_4 = arith.constant 0 : index
    %c0_5 = arith.constant 0 : index
    %6 = vector.load %arg4[%c0_4, %c0_5] : memref<1x32xf32, #tpu.memory_space<vmem>>, vector<1x32xf32>
    %7 = vector.broadcast %6 : vector<1x32xf32> to vector<16x32xf32>
    %8 = arith.addf %5, %7 : vector<16x32xf32>
    %cst_6 = arith.constant 5.000000e-01 : f32
    %9 = vector.broadcast %cst_6 : f32 to vector<16x32xf32>
    %10 = arith.mulf %9, %8 : vector<16x32xf32>
    %cst_7 = arith.constant 0.707106769 : f32
    %11 = vector.broadcast %cst_7 : f32 to vector<16x32xf32>
    %12 = arith.mulf %8, %11 : vector<16x32xf32>
    %13 = math.erf %12 : vector<16x32xf32>
    %cst_8 = arith.constant 1.000000e+00 : f32
    %14 = vector.broadcast %cst_8 : f32 to vector<16x32xf32>
    %15 = arith.addf %14, %13 : vector<16x32xf32>
    %16 = arith.mulf %10, %15 : vector<16x32xf32>
    %c0_9 = arith.constant 0 : index
    %c0_10 = arith.constant 0 : index
    %17 = vector.load %arg8[%c0_9, %c0_10] : memref<16x16xf32, #tpu.memory_space<vmem>>, vector<16x16xf32>
    %c0_11 = arith.constant 0 : index
    %c0_12 = arith.constant 0 : index
    %18 = vector.load %arg5[%c0_11, %c0_12] : memref<32x16xf32, #tpu.memory_space<vmem>>, vector<32x16xf32>
    %cst_13 = arith.constant dense<0.000000e+00> : vector<16x16xf32>
    %19 = tpu.matmul %16, %18, %cst_13 {dimension_numbers = #tpu.dot_dimension_numbers<[1], [0], [0], [1], [0, 0, 1, 1], [], []>} : vector<16x32xf32>, vector<32x16xf32>, vector<16x16xf32> -> vector<16x16xf32>
    %20 = arith.addf %17, %19 : vector<16x16xf32>
    %c0_14 = arith.constant 0 : index
    %c0_15 = arith.constant 0 : index
    %21 = vector.load %arg8[%c0_14, %c0_15] : memref<16x16xf32, #tpu.memory_space<vmem>>, vector<16x16xf32>
    tpu.vector_store %arg8[%c0_14, %c0_15], %20 {strides = array<i32>} : memref<16x16xf32, #tpu.memory_space<vmem>>, vector<16x16xf32>,
    %c0_i32_16 = arith.constant 0 : i32
    %22 = arith.cmpi eq, %arg1, %c0_i32_16 : i32
    %23 = arith.extui %22 : i1 to i32
    %c0_i32_17 = arith.constant 0 : i32
    %24 = arith.cmpi ne, %23, %c0_i32_17 : i32
    scf.if %24 {
      %c0_18 = arith.constant 0 : index
      %c0_19 = arith.constant 0 : index
      %25 = vector.load %arg8[%c0_18, %c0_19] : memref<16x16xf32, #tpu.memory_space<vmem>>, vector<16x16xf32>
      %c0_20 = arith.constant 0 : index
      %c0_21 = arith.constant 0 : index
      %26 = vector.load %arg6[%c0_20, %c0_21] : memref<1x16xf32, #tpu.memory_space<vmem>>, vector<1x16xf32>
      %27 = vector.broadcast %26 : vector<1x16xf32> to vector<16x16xf32>
      %28 = arith.addf %25, %27 : vector<16x16xf32>
      %c0_22 = arith.constant 0 : index
      %c0_23 = arith.constant 0 : index
      %29 = vector.load %arg7[%c0_22, %c0_23] : memref<16x16xf32, #tpu.memory_space<vmem>>, vector<16x16xf32>
      tpu.vector_store %arg7[%c0_22, %c0_23], %28 {strides = array<i32>} : memref<16x16xf32, #tpu.memory_space<vmem>>, vector<16x16xf32>,
    } else {
    }
    return
  }
  func.func @transform_0(%arg0: i32, %arg1: i32) -> (i32, i32) {
    %c0_i32 = arith.constant 0 : i32
    %c0_i32_0 = arith.constant 0 : i32
    return %arg0, %c0_i32 : i32, i32
  }
  func.func @transform_1(%arg0: i32, %arg1: i32) -> (i32, i32) {
    %c0_i32 = arith.constant 0 : i32
    %c0_i32_0 = arith.constant 0 : i32
    return %c0_i32, %arg1 : i32, i32
  }
  func.func @transform_2(%arg0: i32, %arg1: i32) -> (i32, i32) {
    %c0_i32 = arith.constant 0 : i32
    %c0_i32_0 = arith.constant 0 : i32
    return %c0_i32, %arg1 : i32, i32
  }
  func.func @transform_3(%arg0: i32, %arg1: i32) -> (i32, i32) {
    %c0_i32 = arith.constant 0 : i32
    %c0_i32_0 = arith.constant 0 : i32
    return %arg1, %c0_i32 : i32, i32
  }
  func.func @transform_4(%arg0: i32, %arg1: i32) -> (i32, i32) {
    %c0_i32 = arith.constant 0 : i32
    %c0_i32_0 = arith.constant 0 : i32
    %c0_i32_1 = arith.constant 0 : i32
    return %c0_i32, %c0_i32_0 : i32, i32
  }
  func.func @transform_5(%arg0: i32, %arg1: i32) -> (i32, i32) {
    %c0_i32 = arith.constant 0 : i32
    %c0_i32_0 = arith.constant 0 : i32
    return %arg0, %c0_i32 : i32, i32
  }
}

</mosaic_0001>

<bundles_post_ra>
// kernel: _mlp_forward_2d.1
= control target key start
LH: loop header
LB: loop body
LE: loop exit
PB: predicated region body
PF: predicated region fallthrough
CT: control target
= control target key end

     0   :  { %vm25_vm0 = vcmask 130048   ;;  %s394_s0 = inlined_call_operand.vmem [shape: f32[16,16], index: 0, kind: input, shape index: {}]   ;;  %s395_s1 = inlined_call_operand.vmem [shape: f32[16,32], index: 1, kind: input, shape index: {}]   ;;  %s396_s2 = inlined_call_operand.vmem [shape: f32[1,32], index: 2, kind: input, shape index: {}]   ;;  %s397_s3 = inlined_call_operand.vmem [shape: f32[32,16], index: 3, kind: input, shape index: {}]   ;;  %s398_s4 = inlined_call_operand.vmem [shape: f32[1,16], index: 4, kind: input, shape index: {}]   ;;  %s399_s5 = inlined_call_operand.hbm [shape: f32[16,16], index: 5, kind: output, shape index: {}]  }
   0x1   :  { %v31_v0 = vld [vmem:[%s395_s1 + $0x8] sm:$0xff]  ;;  %v30_v1 = vld [vmem:[%s395_s1] sm:$0xff] }
   0x2   :  { %v28_v2 = vld [vmem:[%s394_s0] sm:$0xff]  ;;  %271 = vmatprep.subr.mxu0 %v31_v0 }
   0x3   :  { %275 = vmatprep.mubr.msk.f32.mxu0 %vm25_vm0, %v28_v2 }
   0x4   :  { %10 = vsyncpa [#allocation4], 0  ;;  %272 = vmatpush3.msra.mxu0 %v31_v0  ;;  %v29_v3 = vld [vmem:[%s394_s0 + $0x8] sm:$0xff]  ;;  %v136_v4 = vld [vmem:[%s397_s3 + $0x18] sm:$0xff]  ;;  %v319_v8 = vmov 0.0   ;;  %vm137_vm1 = vcmask 261120  }
   0x5   :  { %273 = vmatprep.subr.mxu0 %v30_v1  ;;  %278 = vmatprep.subr.mxu1 %v136_v4  ;;  %v135_v5 = vld [vmem:[%s397_s3 + $0x10] sm:$0xff]  ;;  %v134_v6 = vld [vmem:[%s397_s3 + $0x8] sm:$0xff]  ;;  %v133_v7 = vld [vmem:[%s397_s3] sm:$0xff]  ;;  %27 = vst.msk [vmem:[#allocation2 + $0x8] sm:$0xff] %vm25_vm0, %v319_v8  ;;  %s320_s9 = smov [#allocation3]  }
   0x6   :  { %274 = vmatpush3.msra.mxu0 %v30_v1  ;;  %279 = vmatpush3.msra.mxu1 %v136_v4  ;;  %26 = vst.msk [vmem:[#allocation2] sm:$0xff] %vm25_vm0, %v319_v8  ;;  %v255_v9 = vld [vmem:[%s396_s2] ss:$0 sm:$0xff]  ;;  %s244_s10 = sshll.u32 %s320_s9, 4  ;;  %s245_s10 = int_to_ptr.vmem [resolvable:$true] %s244_s10 }
   0x7   :  { %276 = vmatmul.mubr.msk.f32.vlgmr.msra.gmra.mxu0 %vm25_vm0, %v29_v3  ;;  %280 = vmatprep.subr.mxu1 %v135_v5  ;;  %v260_v30 = vld [vmem:[%s398_s4] ss:$0 sm:$0xff]  ;;  %s297_s11 = scalar_lea.vmem %s245_s10, 256  ;;  %p302_p1 = scmp.lt.s32.totalorder %s245_s10, %s245_s10 }
   0x8   :  { %281 = vmatpush3.msra.mxu1 %v135_v5  ;;  %p298_p0 = scmp.ne.s32.totalorder %s245_s10, %s297_s11  ;;  %p303_p2 = scmp.lt.s32.totalorder %s297_s11, %s297_s11 }
   0x9   :  { %282 = vmatprep.subr.mxu1 %v134_v6 }
   0xa   :  { %283 = vmatpush3.msra.mxu1 %v134_v6  ;;  %p304_p3 = por %p303_p2, %p302_p1 }
   0xb   :  { %284 = vmatprep.subr.mxu1 %v133_v7 }
   0xc   :  { %285 = vmatpush3.msra.mxu1 %v133_v7  ;;  %v132_v24 = vld [vmem:[#allocation2 + $0x8] sm:$0xff]  ;;  %p305_p4 = pnand %p304_p3, %p298_p0 }
   0xd   :  { %v131_v26 = vld [vmem:[#allocation2] sm:$0xff] }
  0xc7   :  { %v277_v10 = vpop.f32.mrf.mxu0 }
  0xc8   :  { %v118_v11 = vadd.f32 %v277_v10, %v255_v9 }
  0xc9   :  { %v112_v12 = vpop.f32.mrf.mxu0 }
  0xca   :  { %v124_v13 = vmul.f32 0.70710677, %v118_v11  ;;  %v113_v14 = vadd.f32 %v255_v9, %v112_v12  ;;  %v122_v21 = vmul.f32 0.5, %v118_v11 }
  0xcc   :  { %293 = verf.f32 %v124_v13  ;;  %v123_v15 = vmul.f32 0.70710677, %v113_v14  ;;  %v121_v19 = vmul.f32 0.5, %v113_v14 }
  0xce   :  { %295 = verf.f32 %v123_v15 }
  0xd9   :  { %v294_v16 = vpop.eup %293 }
  0xda   :  { %v128_v18 = vadd.f32 1.0, %v294_v16 }
  0xdb   :  { %v296_v17 = vpop.eup %295 }
  0xdc   :  { %v127_v20 = vadd.f32 1.0, %v296_v17  ;;  %v130_v23 = vmul.f32 %v128_v18, %v122_v21 }
  0xde   :  { %v129_v22 = vmul.f32 %v127_v20, %v121_v19 }
  0xe0   :  { %286 = vmatprep.mubr.msk.f32.mxu1 %vm137_vm1, %v129_v22 }
  0xe1   :  { %287 = vmatmul.mubr.msk.f32.vlgmr.msra.gmra.mxu1 %vm137_vm1, %v130_v23 }
 0x1a1   :  { %v288_v25 = vpop.f32.mrf.mxu1 }
 0x1a2   :  { %v220_v27 = vadd.f32 %v288_v25, %v132_v24 }
 0x1a3   :  { %v210_v28 = vpop.f32.mrf.mxu1 }
 0x1a4   :  { %222 = vst.msk [vmem:[#allocation2 + $0x8] sm:$0xff] %vm25_vm0, %v220_v27  ;;  %v219_v29 = vadd.f32 %v210_v28, %v131_v26 }
 0x1a6   :  { %221 = vst.msk [vmem:[#allocation2] sm:$0xff] %vm25_vm0, %v219_v29 }
 0x1ab   :  { %v227_v31 = vld [vmem:[#allocation2 + $0x8] sm:$0xff] }
 0x1ac   :  { %v236_v32 = vadd.f32 %v260_v30, %v227_v31 }
 0x1ad   :  { %v226_v33 = vld [vmem:[#allocation2] sm:$0xff] }
 0x1ae   :  { %v235_v34 = vadd.f32 %v260_v30, %v226_v33  ;;  %238 = vst.msk [vmem:[#allocation3 + $0x8] sm:$0xff] %vm25_vm0, %v236_v32 }
 0x1b0   :  { %237 = vst.msk [vmem:[#allocation3] sm:$0xff] %vm25_vm0, %v235_v34 }
 0x1b1   :  { %308 = shalt.err (!%p305_p4)
}
 0x1b2   :  { %s321_s12 = smov 128   ;;  %s322_s4 = smov 8  }
 0x1b3   :  { %250 = dma.vmem_to_hbm [thread:$0]  %s245_s10, 256, %s399_s5, [#allocation4], %s321_s12, %s321_s12, %s322_s4  }
 0x1b4   :  { %317 = dma.done.wait [#allocation4], 256  }
 0x1b5   :  { %318 = vsyncadd [#allocation4], 4294967040 }
 0x1b6   :  { %254 = vsyncpa [#allocation4], 1 }

</bundles_post_ra>
